<compile_context>
chip_gen: v6e
topology: v6e:2x2x1
jax: 0.10.0
libtpu: 0.0.40
codegen_flags: <defaults>
</compile_context>

<pallas_src>
import jax
import jax.numpy as jnp
import numpy as np
from jax import lax
from jax.experimental import pallas as pl
from jax.experimental.pallas import tpu as pltpu

KH = KW = 3
EPS = 1e-5
_VMEM_LIMIT = 32 * 1024 * 1024  # safe on v5e/v6e/v7x; tiles here are KB-scale


# ---------------------------------------------------------------------------
# Glue helpers
# ---------------------------------------------------------------------------
def _build_weight_mask(dw_w, H, W):
    """Per-tap weight * padding-validity mask, on the flattened spatial axis.

    dw_w: (Cin, KH, KW) depthwise taps (PyTorch layout (Cin,1,KH,KW) squeezed).
    Returns (KH*KW, Cin, H*W) float32 where entry [k, c, p] is the tap weight
    if the shifted source pixel for output position p is inside the image
    (padding=1 zero-padding), else 0.  Tiny (9*Cin*H*W floats), built once.
    """
    Cin = dw_w.shape[0]
    S = H * W
    hh = jnp.arange(S, dtype=jnp.int32) // W
    ww = jnp.arange(S, dtype=jnp.int32) % W
    masks = []
    for dh in range(KH):
        for dwi in range(KW):
            vh = jnp.logical_and(hh + (dh - 1) >= 0, hh + (dh - 1) < H)
            vw = jnp.logical_and(ww + (dwi - 1) >= 0, ww + (dwi - 1) < W)
            masks.append(jnp.logical_and(vh, vw).astype(jnp.float32))
    mask = jnp.stack(masks, axis=0)                  # (9, S)
    taps = dw_w.reshape(Cin, KH * KW).T              # (9, Cin), k = dh*KW+dw
    return taps[:, :, None] * mask[:, None, :]       # (9, Cin, S)


def _fold_bn(sum_, sumsq, count, gamma, beta):
    mean = sum_ / count
    var = jnp.maximum(sumsq / count - mean * mean, 0.0)   # biased (training BN)
    scale = gamma / jnp.sqrt(var + EPS)
    shift = beta - mean * scale
    return scale, shift


# ---------------------------------------------------------------------------
# Block forward
# ---------------------------------------------------------------------------
def dsnet_block(x_nchw, params):
    x = x_nchw.astype(jnp.float32)
    N, Cin, H, W = x.shape
    Cout = params["pw_w"].shape[0]
    S = H * W

    # Channel tiling for the depthwise pass (halo-free; gives >1 step per
    # TensorCore on v7x even when N is tiny).
    CT = 8 if (Cin % 8 == 0 and Cin > 8) else Cin
    n_ct = Cin // CT

    x3 = x.reshape(N, Cin, S)                         # free reshape (contiguous)
    wmask = _build_weight_mask(params["dw_w"], H, W)  # (9, Cin, S)

    # -------- Kernel A: depthwise 3x3 conv + BN1 partial stats -------------
    def dw_kernel(x_ref, wm_ref, y_ref, s_ref, q_ref):
        xin = x_ref[0]                                # (CT, S) lane-dense
        acc = jnp.zeros(xin.shape, jnp.float32)
        for dh in range(KH):
            for dwi in range(KW):
                k = dh * KW + dwi
                sh = (-((dh - 1) * W + (dwi - 1))) % S
                xs = xin if sh == 0 else pltpu.roll(xin, shift=sh, axis=1)
                acc = acc + xs * wm_ref[k]            # masked tap weight
        y_ref[...] = acc.reshape(y_ref.shape)
        s_ref[...] = jnp.sum(acc, axis=-1, keepdims=True).reshape(s_ref.shape)
        q_ref[...] = jnp.sum(acc * acc, axis=-1, keepdims=True).reshape(q_ref.shape)

    y1, s1p, q1p = pl.pallas_call(
        dw_kernel,
        out_shape=(
            jax.ShapeDtypeStruct((N, Cin, S), jnp.float32),
            jax.ShapeDtypeStruct((N, n_ct, CT, 1), jnp.float32),
            jax.ShapeDtypeStruct((N, n_ct, CT, 1), jnp.float32),
        ),
        grid=(N, n_ct),
        in_specs=[
            pl.BlockSpec((1, CT, S), lambda n, c: (n, c, 0)),
            pl.BlockSpec((KH * KW, CT, S), lambda n, c: (0, c, 0)),
        ],
        out_specs=(
            pl.BlockSpec((1, CT, S), lambda n, c: (n, c, 0)),
            pl.BlockSpec((1, 1, CT, 1), lambda n, c: (n, c, 0, 0)),
            pl.BlockSpec((1, 1, CT, 1), lambda n, c: (n, c, 0, 0)),
        ),
        compiler_params=pltpu.CompilerParams(
            dimension_semantics=("parallel", "parallel"),
            vmem_limit_bytes=_VMEM_LIMIT,
        ),
    )(x3, wmask)

    # BN1 fold (tiny Cin-sized glue on the partial stats)
    cnt = jnp.float32(N * S)
    scale1, shift1 = _fold_bn(
        s1p.reshape(N, Cin).sum(axis=0), q1p.reshape(N, Cin).sum(axis=0),
        cnt, params["gamma1"], params["beta1"])

    # -------- Kernel B: BN1 + ReLU + 1x1 pointwise matmul + BN2 partials ----
    TMS = S          # full spatial slab per batch element (256 lanes here)
    n_s = 1          # TODO(synk): tile this axis (multiples of 128) for very large H*W

    def pw_kernel(y_ref, sc_ref, sh_ref, w_ref, z_ref, s_ref, q_ref):
        h = jnp.maximum(y_ref[0] * sc_ref[...] + sh_ref[...], 0.0)   # (Cin, TMS)
        z = jnp.dot(w_ref[...], h, preferred_element_type=jnp.float32)  # (Cout, TMS)
        z_ref[...] = z.reshape(z_ref.shape)
        s_ref[...] = jnp.sum(z, axis=-1, keepdims=True).reshape(s_ref.shape)
        q_ref[...] = jnp.sum(z * z, axis=-1, keepdims=True).reshape(q_ref.shape)

    zT, s2p, q2p = pl.pallas_call(
        pw_kernel,
        out_shape=(
            jax.ShapeDtypeStruct((N, Cout, S), jnp.float32),
            jax.ShapeDtypeStruct((N, n_s, Cout, 1), jnp.float32),
            jax.ShapeDtypeStruct((N, n_s, Cout, 1), jnp.float32),
        ),
        grid=(N, n_s),
        in_specs=[
            pl.BlockSpec((1, Cin, TMS), lambda n, s: (n, 0, s)),
            pl.BlockSpec((Cin, 1), lambda n, s: (0, 0)),
            pl.BlockSpec((Cin, 1), lambda n, s: (0, 0)),
            pl.BlockSpec((Cout, Cin), lambda n, s: (0, 0)),
        ],
        out_specs=(
            pl.BlockSpec((1, Cout, TMS), lambda n, s: (n, 0, s)),
            pl.BlockSpec((1, 1, Cout, 1), lambda n, s: (n, s, 0, 0)),
            pl.BlockSpec((1, 1, Cout, 1), lambda n, s: (n, s, 0, 0)),
        ),
        compiler_params=pltpu.CompilerParams(
            dimension_semantics=("parallel", "parallel"),
            vmem_limit_bytes=_VMEM_LIMIT,
        ),
    )(y1, scale1.reshape(Cin, 1), shift1.reshape(Cin, 1), params["pw_w"])

    # BN2 fold (tiny Cout-sized glue)
    scale2, shift2 = _fold_bn(
        s2p.reshape(N * n_s, Cout).sum(axis=0), q2p.reshape(N * n_s, Cout).sum(axis=0),
        cnt, params["gamma2"], params["beta2"])

    # -------- Kernel C: BN2 + ReLU (lane-dense, writes NCHW layout) ---------
    def bn2_kernel(z_ref, sc_ref, sh_ref, o_ref):
        o = jnp.maximum(z_ref[0] * sc_ref[...] + sh_ref[...], 0.0)
        o_ref[...] = o.reshape(o_ref.shape)

    out3 = pl.pallas_call(
        bn2_kernel,
        out_shape=jax.ShapeDtypeStruct((N, Cout, S), jnp.float32),
        grid=(N, n_s),
        in_specs=[
            pl.BlockSpec((1, Cout, TMS), lambda n, s: (n, 0, s)),
            pl.BlockSpec((Cout, 1), lambda n, s: (0, 0)),
            pl.BlockSpec((Cout, 1), lambda n, s: (0, 0)),
        ],
        out_specs=pl.BlockSpec((1, Cout, TMS), lambda n, s: (n, 0, s)),
        compiler_params=pltpu.CompilerParams(
            dimension_semantics=("parallel", "parallel"),
            vmem_limit_bytes=_VMEM_LIMIT,
        ),
    )(zT, scale2.reshape(Cout, 1), shift2.reshape(Cout, 1))

    return out3.reshape(N, Cout, H, W)                # free reshape -> NCHW


# ---------------------------------------------------------------------------
# Pure-JAX reference (independent code path, uses lax.conv)
# ---------------------------------------------------------------------------
def reference(x_nchw, params):
    x = x_nchw.astype(jnp.float32)
    Cin = x.shape[1]
    rhs = params["dw_w"][:, None, :, :]               # (Cin, 1, 3, 3)
    y1 = lax.conv_general_dilated(
        x, rhs, window_strides=(1, 1), padding=((1, 1), (1, 1)),
        dimension_numbers=("NCHW", "OIHW", "NCHW"), feature_group_count=Cin)

    def bn_relu(t, g, b):
        m = t.mean(axis=(0, 2, 3), keepdims=True)
        v = t.var(axis=(0, 2, 3), keepdims=True)      # biased, training BN
        return jnp.maximum((t - m) / jnp.sqrt(v + EPS) * g[None, :, None, None]
                           + b[None, :, None, None], 0.0)

    h = bn_relu(y1, params["gamma1"], params["beta1"])
    z = jnp.einsum("nchw,oc->nohw", h, params["pw_w"])
    return bn_relu(z, params["gamma2"], params["beta2"])


# ---------------------------------------------------------------------------
def make_params(key, cin, cout):
    k1, k2, k3, k4, k5, k6 = jax.random.split(key, 6)
    return {
        # PyTorch depthwise weight (Cin,1,3,3) stored squeezed as (Cin,3,3)
        "dw_w": 0.2 * jax.random.normal(k1, (cin, KH, KW), jnp.float32),
        # PyTorch pointwise weight (Cout,Cin,1,1) stored as (Cout,Cin)
        "pw_w": 0.2 * jax.random.normal(k2, (cout, cin), jnp.float32),
        "gamma1": 0.5 + jax.random.uniform(k3, (cin,), jnp.float32),
        "beta1": 0.1 * jax.random.normal(k4, (cin,), jnp.float32),
        "gamma2": 0.5 + jax.random.uniform(k5, (cout,), jnp.float32),
        "beta2": 0.1 * jax.random.normal(k6, (cout,), jnp.float32),
    }


if __name__ == "__main__":
    N, Cin, Cout, H, W = 2, 16, 32, 16, 16
    key = jax.random.PRNGKey(0)
    kx, kp = jax.random.split(key)
    x = jax.random.normal(kx, (N, Cin, H, W), jnp.float32)   # NCHW, like PyTorch
    params = make_params(kp, Cin, Cout)

    out = jax.block_until_ready(jax.jit(dsnet_block)(x, params))
    ref = jax.block_until_ready(reference(x, params))

    np.testing.assert_allclose(np.asarray(out), np.asarray(ref), rtol=2e-3, atol=2e-3)
    assert out.shape == (N, Cout, H, W)
    print("KERNEL_OK")
</pallas_src>

<mosaic_0001>
module attributes {stable_mosaic.version = 11 : i64} {
  func.func @dw_kernel(%arg0: i32, %arg1: i32, %arg2: memref<1x8x256xf32, #tpu.memory_space<vmem>>, %arg3: memref<9x8x256xf32, #tpu.memory_space<vmem>>, %arg4: memref<1x8x256xf32, #tpu.memory_space<vmem>>, %arg5: memref<1x1x8x1xf32, #tpu.memory_space<vmem>>, %arg6: memref<1x1x8x1xf32, #tpu.memory_space<vmem>>) attributes {dimension_semantics = [#tpu.dimension_semantics<parallel>, #tpu.dimension_semantics<parallel>], iteration_bounds = array<i64: 2, 2>, scalar_prefetch = 0 : i64, scratch_operands = 0 : i64, tpu.core_type = #tpu.core_type<tc>, window_params = [{transform_indices = @transform_0, window_bounds = array<i64: 1, 8, 256>}, {transform_indices = @transform_1, window_bounds = array<i64: 9, 8, 256>}, {transform_indices = @transform_2, window_bounds = array<i64: 1, 8, 256>}, {transform_indices = @transform_3, window_bounds = array<i64: 1, 1, 8, 1>}, {transform_indices = @transform_4, window_bounds = array<i64: 1, 1, 8, 1>}]} {
    %c0 = arith.constant 0 : index
    %c0_0 = arith.constant 0 : index
    %c0_1 = arith.constant 0 : index
    %0 = vector.load %arg2[%c0, %c0_0, %c0_1] : memref<1x8x256xf32, #tpu.memory_space<vmem>>, vector<1x8x256xf32>
    %1 = vector.shape_cast %0 : vector<1x8x256xf32> to vector<8x256xf32>
    %cst = arith.constant 0.000000e+00 : f32
    %2 = vector.broadcast %cst : f32 to vector<8x256xf32>
    %c17_i32 = arith.constant 17 : i32
    %3 = tpu.dynamic_rotate %1 by %c17_i32 dim 1 : vector<8x256xf32>, i32 -> vector<8x256xf32>
    %c0_2 = arith.constant 0 : index
    %c0_3 = arith.constant 0 : index
    %c0_4 = arith.constant 0 : index
    %4 = vector.load %arg3[%c0_2, %c0_3, %c0_4] : memref<9x8x256xf32, #tpu.memory_space<vmem>>, vector<1x8x256xf32>
    %5 = vector.shape_cast %4 : vector<1x8x256xf32> to vector<8x256xf32>
    %6 = arith.mulf %3, %5 : vector<8x256xf32>
    %7 = arith.addf %2, %6 : vector<8x256xf32>
    %c16_i32 = arith.constant 16 : i32
    %8 = tpu.dynamic_rotate %1 by %c16_i32 dim 1 : vector<8x256xf32>, i32 -> vector<8x256xf32>
    %c1 = arith.constant 1 : index
    %c0_5 = arith.constant 0 : index
    %c0_6 = arith.constant 0 : index
    %9 = vector.load %arg3[%c1, %c0_5, %c0_6] : memref<9x8x256xf32, #tpu.memory_space<vmem>>, vector<1x8x256xf32>
    %10 = vector.shape_cast %9 : vector<1x8x256xf32> to vector<8x256xf32>
    %11 = arith.mulf %8, %10 : vector<8x256xf32>
    %12 = arith.addf %7, %11 : vector<8x256xf32>
    %c15_i32 = arith.constant 15 : i32
    %13 = tpu.dynamic_rotate %1 by %c15_i32 dim 1 : vector<8x256xf32>, i32 -> vector<8x256xf32>
    %c2 = arith.constant 2 : index
    %c0_7 = arith.constant 0 : index
    %c0_8 = arith.constant 0 : index
    %14 = vector.load %arg3[%c2, %c0_7, %c0_8] : memref<9x8x256xf32, #tpu.memory_space<vmem>>, vector<1x8x256xf32>
    %15 = vector.shape_cast %14 : vector<1x8x256xf32> to vector<8x256xf32>
    %16 = arith.mulf %13, %15 : vector<8x256xf32>
    %17 = arith.addf %12, %16 : vector<8x256xf32>
    %c1_i32 = arith.constant 1 : i32
    %18 = tpu.dynamic_rotate %1 by %c1_i32 dim 1 : vector<8x256xf32>, i32 -> vector<8x256xf32>
    %c3 = arith.constant 3 : index
    %c0_9 = arith.constant 0 : index
    %c0_10 = arith.constant 0 : index
    %19 = vector.load %arg3[%c3, %c0_9, %c0_10] : memref<9x8x256xf32, #tpu.memory_space<vmem>>, vector<1x8x256xf32>
    %20 = vector.shape_cast %19 : vector<1x8x256xf32> to vector<8x256xf32>
    %21 = arith.mulf %18, %20 : vector<8x256xf32>
    %22 = arith.addf %17, %21 : vector<8x256xf32>
    %c4 = arith.constant 4 : index
    %c0_11 = arith.constant 0 : index
    %c0_12 = arith.constant 0 : index
    %23 = vector.load %arg3[%c4, %c0_11, %c0_12] : memref<9x8x256xf32, #tpu.memory_space<vmem>>, vector<1x8x256xf32>
    %24 = vector.shape_cast %23 : vector<1x8x256xf32> to vector<8x256xf32>
    %25 = arith.mulf %1, %24 : vector<8x256xf32>
    %26 = arith.addf %22, %25 : vector<8x256xf32>
    %c255_i32 = arith.constant 255 : i32
    %27 = tpu.dynamic_rotate %1 by %c255_i32 dim 1 : vector<8x256xf32>, i32 -> vector<8x256xf32>
    %c5 = arith.constant 5 : index
    %c0_13 = arith.constant 0 : index
    %c0_14 = arith.constant 0 : index
    %28 = vector.load %arg3[%c5, %c0_13, %c0_14] : memref<9x8x256xf32, #tpu.memory_space<vmem>>, vector<1x8x256xf32>
    %29 = vector.shape_cast %28 : vector<1x8x256xf32> to vector<8x256xf32>
    %30 = arith.mulf %27, %29 : vector<8x256xf32>
    %31 = arith.addf %26, %30 : vector<8x256xf32>
    %c241_i32 = arith.constant 241 : i32
    %32 = tpu.dynamic_rotate %1 by %c241_i32 dim 1 : vector<8x256xf32>, i32 -> vector<8x256xf32>
    %c6 = arith.constant 6 : index
    %c0_15 = arith.constant 0 : index
    %c0_16 = arith.constant 0 : index
    %33 = vector.load %arg3[%c6, %c0_15, %c0_16] : memref<9x8x256xf32, #tpu.memory_space<vmem>>, vector<1x8x256xf32>
    %34 = vector.shape_cast %33 : vector<1x8x256xf32> to vector<8x256xf32>
    %35 = arith.mulf %32, %34 : vector<8x256xf32>
    %36 = arith.addf %31, %35 : vector<8x256xf32>
    %c240_i32 = arith.constant 240 : i32
    %37 = tpu.dynamic_rotate %1 by %c240_i32 dim 1 : vector<8x256xf32>, i32 -> vector<8x256xf32>
    %c7 = arith.constant 7 : index
    %c0_17 = arith.constant 0 : index
    %c0_18 = arith.constant 0 : index
    %38 = vector.load %arg3[%c7, %c0_17, %c0_18] : memref<9x8x256xf32, #tpu.memory_space<vmem>>, vector<1x8x256xf32>
    %39 = vector.shape_cast %38 : vector<1x8x256xf32> to vector<8x256xf32>
    %40 = arith.mulf %37, %39 : vector<8x256xf32>
    %41 = arith.addf %36, %40 : vector<8x256xf32>
    %c239_i32 = arith.constant 239 : i32
    %42 = tpu.dynamic_rotate %1 by %c239_i32 dim 1 : vector<8x256xf32>, i32 -> vector<8x256xf32>
    %c8 = arith.constant 8 : index
    %c0_19 = arith.constant 0 : index
    %c0_20 = arith.constant 0 : index
    %43 = vector.load %arg3[%c8, %c0_19, %c0_20] : memref<9x8x256xf32, #tpu.memory_space<vmem>>, vector<1x8x256xf32>
    %44 = vector.shape_cast %43 : vector<1x8x256xf32> to vector<8x256xf32>
    %45 = arith.mulf %42, %44 : vector<8x256xf32>
    %46 = arith.addf %41, %45 : vector<8x256xf32>
    %47 = vector.shape_cast %46 : vector<8x256xf32> to vector<1x8x256xf32>
    %c0_21 = arith.constant 0 : index
    %c0_22 = arith.constant 0 : index
    %c0_23 = arith.constant 0 : index
    %48 = vector.load %arg4[%c0_21, %c0_22, %c0_23] : memref<1x8x256xf32, #tpu.memory_space<vmem>>, vector<1x8x256xf32>
    tpu.vector_store %arg4[%c0_21, %c0_22, %c0_23], %47 {strides = array<i32>} : memref<1x8x256xf32, #tpu.memory_space<vmem>>, vector<1x8x256xf32>,
    %cst_24 = arith.constant dense<0.000000e+00> : vector<8xf32>
    %49 = vector.multi_reduction <add>, %46, %cst_24 [1] : vector<8x256xf32> to vector<8xf32>
    %50 = vector.shape_cast %49 : vector<8xf32> to vector<8x1xf32>
    %51 = vector.shape_cast %50 : vector<8x1xf32> to vector<1x1x8x1xf32>
    %c0_25 = arith.constant 0 : index
    %c0_26 = arith.constant 0 : index
    %c0_27 = arith.constant 0 : index
    %c0_28 = arith.constant 0 : index
    %52 = vector.load %arg5[%c0_25, %c0_26, %c0_27, %c0_28] : memref<1x1x8x1xf32, #tpu.memory_space<vmem>>, vector<1x1x8x1xf32>
    tpu.vector_store %arg5[%c0_25, %c0_26, %c0_27, %c0_28], %51 {strides = array<i32>} : memref<1x1x8x1xf32, #tpu.memory_space<vmem>>, vector<1x1x8x1xf32>,
    %53 = arith.mulf %46, %46 : vector<8x256xf32>
    %cst_29 = arith.constant dense<0.000000e+00> : vector<8xf32>
    %54 = vector.multi_reduction <add>, %53, %cst_29 [1] : vector<8x256xf32> to vector<8xf32>
    %55 = vector.shape_cast %54 : vector<8xf32> to vector<8x1xf32>
    %56 = vector.shape_cast %55 : vector<8x1xf32> to vector<1x1x8x1xf32>
    %c0_30 = arith.constant 0 : index
    %c0_31 = arith.constant 0 : index
    %c0_32 = arith.constant 0 : index
    %c0_33 = arith.constant 0 : index
    %57 = vector.load %arg6[%c0_30, %c0_31, %c0_32, %c0_33] : memref<1x1x8x1xf32, #tpu.memory_space<vmem>>, vector<1x1x8x1xf32>
    tpu.vector_store %arg6[%c0_30, %c0_31, %c0_32, %c0_33], %56 {strides = array<i32>} : memref<1x1x8x1xf32, #tpu.memory_space<vmem>>, vector<1x1x8x1xf32>,
    return
  }
  func.func @transform_0(%arg0: i32, %arg1: i32) -> (i32, i32, i32) {
    %c0_i32 = arith.constant 0 : i32
    %c0_i32_0 = arith.constant 0 : i32
    return %arg0, %arg1, %c0_i32 : i32, i32, i32
  }
  func.func @transform_1(%arg0: i32, %arg1: i32) -> (i32, i32, i32) {
    %c0_i32 = arith.constant 0 : i32
    %c0_i32_0 = arith.constant 0 : i32
    %c0_i32_1 = arith.constant 0 : i32
    return %c0_i32, %arg1, %c0_i32_0 : i32, i32, i32
  }
  func.func @transform_2(%arg0: i32, %arg1: i32) -> (i32, i32, i32) {
    %c0_i32 = arith.constant 0 : i32
    %c0_i32_0 = arith.constant 0 : i32
    return %arg0, %arg1, %c0_i32 : i32, i32, i32
  }
  func.func @transform_3(%arg0: i32, %arg1: i32) -> (i32, i32, i32, i32) {
    %c0_i32 = arith.constant 0 : i32
    %c0_i32_0 = arith.constant 0 : i32
    %c0_i32_1 = arith.constant 0 : i32
    return %arg0, %arg1, %c0_i32, %c0_i32_0 : i32, i32, i32, i32
  }
  func.func @transform_4(%arg0: i32, %arg1: i32) -> (i32, i32, i32, i32) {
    %c0_i32 = arith.constant 0 : i32
    %c0_i32_0 = arith.constant 0 : i32
    %c0_i32_1 = arith.constant 0 : i32
    return %arg0, %arg1, %c0_i32, %c0_i32_0 : i32, i32, i32, i32
  }
}

module attributes {stable_mosaic.version = 11 : i64} {
  func.func @bn2_kernel(%arg0: i32, %arg1: i32, %arg2: memref<1x32x256xf32, #tpu.memory_space<vmem>>, %arg3: memref<32x1xf32, #tpu.memory_space<vmem>>, %arg4: memref<32x1xf32, #tpu.memory_space<vmem>>, %arg5: memref<1x32x256xf32, #tpu.memory_space<vmem>>) attributes {dimension_semantics = [#tpu.dimension_semantics<parallel>, #tpu.dimension_semantics<parallel>], iteration_bounds = array<i64: 2, 1>, scalar_prefetch = 0 : i64, scratch_operands = 0 : i64, tpu.core_type = #tpu.core_type<tc>, window_params = [{transform_indices = @transform_0, window_bounds = array<i64: 1, 32, 256>}, {pipeline_mode = #tpu.pipeline_mode<synchronous>, transform_indices = @transform_1, window_bounds = array<i64: 32, 1>}, {pipeline_mode = #tpu.pipeline_mode<synchronous>, transform_indices = @transform_2, window_bounds = array<i64: 32, 1>}, {transform_indices = @transform_3, window_bounds = array<i64: 1, 32, 256>}]} {
    %c0 = arith.constant 0 : index
    %c0_0 = arith.constant 0 : index
    %c0_1 = arith.constant 0 : index
    %0 = vector.load %arg2[%c0, %c0_0, %c0_1] : memref<1x32x256xf32, #tpu.memory_space<vmem>>, vector<1x32x256xf32>
    %1 = vector.shape_cast %0 : vector<1x32x256xf32> to vector<32x256xf32>
    %c0_2 = arith.constant 0 : index
    %c0_3 = arith.constant 0 : index
    %2 = vector.load %arg3[%c0_2, %c0_3] : memref<32x1xf32, #tpu.memory_space<vmem>>, vector<32x1xf32>
    %3 = vector.broadcast %2 : vector<32x1xf32> to vector<32x256xf32>
    %4 = arith.mulf %1, %3 : vector<32x256xf32>
    %c0_4 = arith.constant 0 : index
    %c0_5 = arith.constant 0 : index
    %5 = vector.load %arg4[%c0_4, %c0_5] : memref<32x1xf32, #tpu.memory_space<vmem>>, vector<32x1xf32>
    %6 = vector.broadcast %5 : vector<32x1xf32> to vector<32x256xf32>
    %7 = arith.addf %4, %6 : vector<32x256xf32>
    %cst = arith.constant 0.000000e+00 : f32
    %8 = vector.broadcast %cst : f32 to vector<32x256xf32>
    %9 = arith.maximumf %7, %8 : vector<32x256xf32>
    %10 = vector.shape_cast %9 : vector<32x256xf32> to vector<1x32x256xf32>
    %c0_6 = arith.constant 0 : index
    %c0_7 = arith.constant 0 : index
    %c0_8 = arith.constant 0 : index
    %11 = vector.load %arg5[%c0_6, %c0_7, %c0_8] : memref<1x32x256xf32, #tpu.memory_space<vmem>>, vector<1x32x256xf32>
    tpu.vector_store %arg5[%c0_6, %c0_7, %c0_8], %10 {strides = array<i32>} : memref<1x32x256xf32, #tpu.memory_space<vmem>>, vector<1x32x256xf32>,
    return
  }
  func.func @transform_0(%arg0: i32, %arg1: i32) -> (i32, i32, i32) {
    %c0_i32 = arith.constant 0 : i32
    %c0_i32_0 = arith.constant 0 : i32
    return %arg0, %c0_i32, %arg1 : i32, i32, i32
  }
  func.func @transform_1(%arg0: i32, %arg1: i32) -> (i32, i32) {
    %c0_i32 = arith.constant 0 : i32
    %c0_i32_0 = arith.constant 0 : i32
    %c0_i32_1 = arith.constant 0 : i32
    return %c0_i32, %c0_i32_0 : i32, i32
  }
  func.func @transform_2(%arg0: i32, %arg1: i32) -> (i32, i32) {
    %c0_i32 = arith.constant 0 : i32
    %c0_i32_0 = arith.constant 0 : i32
    %c0_i32_1 = arith.constant 0 : i32
    return %c0_i32, %c0_i32_0 : i32, i32
  }
  func.func @transform_3(%arg0: i32, %arg1: i32) -> (i32, i32, i32) {
    %c0_i32 = arith.constant 0 : i32
    %c0_i32_0 = arith.constant 0 : i32
    return %arg0, %c0_i32, %arg1 : i32, i32, i32
  }
}

module attributes {stable_mosaic.version = 11 : i64} {
  func.func @pw_kernel(%arg0: i32, %arg1: i32, %arg2: memref<1x16x256xf32, #tpu.memory_space<vmem>>, %arg3: memref<16x1xf32, #tpu.memory_space<vmem>>, %arg4: memref<16x1xf32, #tpu.memory_space<vmem>>, %arg5: memref<32x16xf32, #tpu.memory_space<vmem>>, %arg6: memref<1x32x256xf32, #tpu.memory_space<vmem>>, %arg7: memref<1x1x32x1xf32, #tpu.memory_space<vmem>>, %arg8: memref<1x1x32x1xf32, #tpu.memory_space<vmem>>) attributes {dimension_semantics = [#tpu.dimension_semantics<parallel>, #tpu.dimension_semantics<parallel>], iteration_bounds = array<i64: 2, 1>, scalar_prefetch = 0 : i64, scratch_operands = 0 : i64, tpu.core_type = #tpu.core_type<tc>, window_params = [{transform_indices = @transform_0, window_bounds = array<i64: 1, 16, 256>}, {pipeline_mode = #tpu.pipeline_mode<synchronous>, transform_indices = @transform_1, window_bounds = array<i64: 16, 1>}, {pipeline_mode = #tpu.pipeline_mode<synchronous>, transform_indices = @transform_2, window_bounds = array<i64: 16, 1>}, {pipeline_mode = #tpu.pipeline_mode<synchronous>, transform_indices = @transform_3, window_bounds = array<i64: 32, 16>}, {transform_indices = @transform_4, window_bounds = array<i64: 1, 32, 256>}, {transform_indices = @transform_5, window_bounds = array<i64: 1, 1, 32, 1>}, {transform_indices = @transform_6, window_bounds = array<i64: 1, 1, 32, 1>}]} {
    %c0 = arith.constant 0 : index
    %c0_0 = arith.constant 0 : index
    %c0_1 = arith.constant 0 : index
    %0 = vector.load %arg2[%c0, %c0_0, %c0_1] : memref<1x16x256xf32, #tpu.memory_space<vmem>>, vector<1x16x256xf32>
    %1 = vector.shape_cast %0 : vector<1x16x256xf32> to vector<16x256xf32>
    %c0_2 = arith.constant 0 : index
    %c0_3 = arith.constant 0 : index
    %2 = vector.load %arg3[%c0_2, %c0_3] : memref<16x1xf32, #tpu.memory_space<vmem>>, vector<16x1xf32>
    %3 = vector.broadcast %2 : vector<16x1xf32> to vector<16x256xf32>
    %4 = arith.mulf %1, %3 : vector<16x256xf32>
    %c0_4 = arith.constant 0 : index
    %c0_5 = arith.constant 0 : index
    %5 = vector.load %arg4[%c0_4, %c0_5] : memref<16x1xf32, #tpu.memory_space<vmem>>, vector<16x1xf32>
    %6 = vector.broadcast %5 : vector<16x1xf32> to vector<16x256xf32>
    %7 = arith.addf %4, %6 : vector<16x256xf32>
    %cst = arith.constant 0.000000e+00 : f32
    %8 = vector.broadcast %cst : f32 to vector<16x256xf32>
    %9 = arith.maximumf %7, %8 : vector<16x256xf32>
    %c0_6 = arith.constant 0 : index
    %c0_7 = arith.constant 0 : index
    %10 = vector.load %arg5[%c0_6, %c0_7] : memref<32x16xf32, #tpu.memory_space<vmem>>, vector<32x16xf32>
    %cst_8 = arith.constant dense<0.000000e+00> : vector<32x256xf32>
    %11 = tpu.matmul %10, %9, %cst_8 {dimension_numbers = #tpu.dot_dimension_numbers<[1], [0], [0], [1], [0, 0, 1, 1], [], []>} : vector<32x16xf32>, vector<16x256xf32>, vector<32x256xf32> -> vector<32x256xf32>
    %12 = vector.shape_cast %11 : vector<32x256xf32> to vector<1x32x256xf32>
    %c0_9 = arith.constant 0 : index
    %c0_10 = arith.constant 0 : index
    %c0_11 = arith.constant 0 : index
    %13 = vector.load %arg6[%c0_9, %c0_10, %c0_11] : memref<1x32x256xf32, #tpu.memory_space<vmem>>, vector<1x32x256xf32>
    tpu.vector_store %arg6[%c0_9, %c0_10, %c0_11], %12 {strides = array<i32>} : memref<1x32x256xf32, #tpu.memory_space<vmem>>, vector<1x32x256xf32>,
    %cst_12 = arith.constant dense<0.000000e+00> : vector<32xf32>
    %14 = vector.multi_reduction <add>, %11, %cst_12 [1] : vector<32x256xf32> to vector<32xf32>
    %15 = vector.shape_cast %14 : vector<32xf32> to vector<32x1xf32>
    %16 = vector.shape_cast %15 : vector<32x1xf32> to vector<1x1x32x1xf32>
    %c0_13 = arith.constant 0 : index
    %c0_14 = arith.constant 0 : index
    %c0_15 = arith.constant 0 : index
    %c0_16 = arith.constant 0 : index
    %17 = vector.load %arg7[%c0_13, %c0_14, %c0_15, %c0_16] : memref<1x1x32x1xf32, #tpu.memory_space<vmem>>, vector<1x1x32x1xf32>
    tpu.vector_store %arg7[%c0_13, %c0_14, %c0_15, %c0_16], %16 {strides = array<i32>} : memref<1x1x32x1xf32, #tpu.memory_space<vmem>>, vector<1x1x32x1xf32>,
    %18 = arith.mulf %11, %11 : vector<32x256xf32>
    %cst_17 = arith.constant dense<0.000000e+00> : vector<32xf32>
    %19 = vector.multi_reduction <add>, %18, %cst_17 [1] : vector<32x256xf32> to vector<32xf32>
    %20 = vector.shape_cast %19 : vector<32xf32> to vector<32x1xf32>
    %21 = vector.shape_cast %20 : vector<32x1xf32> to vector<1x1x32x1xf32>
    %c0_18 = arith.constant 0 : index
    %c0_19 = arith.constant 0 : index
    %c0_20 = arith.constant 0 : index
    %c0_21 = arith.constant 0 : index
    %22 = vector.load %arg8[%c0_18, %c0_19, %c0_20, %c0_21] : memref<1x1x32x1xf32, #tpu.memory_space<vmem>>, vector<1x1x32x1xf32>
    tpu.vector_store %arg8[%c0_18, %c0_19, %c0_20, %c0_21], %21 {strides = array<i32>} : memref<1x1x32x1xf32, #tpu.memory_space<vmem>>, vector<1x1x32x1xf32>,
    return
  }
  func.func @transform_0(%arg0: i32, %arg1: i32) -> (i32, i32, i32) {
    %c0_i32 = arith.constant 0 : i32
    %c0_i32_0 = arith.constant 0 : i32
    return %arg0, %c0_i32, %arg1 : i32, i32, i32
  }
  func.func @transform_1(%arg0: i32, %arg1: i32) -> (i32, i32) {
    %c0_i32 = arith.constant 0 : i32
    %c0_i32_0 = arith.constant 0 : i32
    %c0_i32_1 = arith.constant 0 : i32
    return %c0_i32, %c0_i32_0 : i32, i32
  }
  func.func @transform_2(%arg0: i32, %arg1: i32) -> (i32, i32) {
    %c0_i32 = arith.constant 0 : i32
    %c0_i32_0 = arith.constant 0 : i32
    %c0_i32_1 = arith.constant 0 : i32
    return %c0_i32, %c0_i32_0 : i32, i32
  }
  func.func @transform_3(%arg0: i32, %arg1: i32) -> (i32, i32) {
    %c0_i32 = arith.constant 0 : i32
    %c0_i32_0 = arith.constant 0 : i32
    %c0_i32_1 = arith.constant 0 : i32
    return %c0_i32, %c0_i32_0 : i32, i32
  }
  func.func @transform_4(%arg0: i32, %arg1: i32) -> (i32, i32, i32) {
    %c0_i32 = arith.constant 0 : i32
    %c0_i32_0 = arith.constant 0 : i32
    return %arg0, %c0_i32, %arg1 : i32, i32, i32
  }
  func.func @transform_5(%arg0: i32, %arg1: i32) -> (i32, i32, i32, i32) {
    %c0_i32 = arith.constant 0 : i32
    %c0_i32_0 = arith.constant 0 : i32
    %c0_i32_1 = arith.constant 0 : i32
    return %arg0, %arg1, %c0_i32, %c0_i32_0 : i32, i32, i32, i32
  }
  func.func @transform_6(%arg0: i32, %arg1: i32) -> (i32, i32, i32, i32) {
    %c0_i32 = arith.constant 0 : i32
    %c0_i32_0 = arith.constant 0 : i32
    %c0_i32_1 = arith.constant 0 : i32
    return %arg0, %arg1, %c0_i32, %c0_i32_0 : i32, i32, i32, i32
  }
}

</mosaic_0001>

<bundles_post_ra>
// kernel: dsnet_block.3
= control target key start
LH: loop header
LB: loop body
LE: loop exit
PB: predicated region body
PF: predicated region fallthrough
CT: control target
= control target key end

     0   :  { %s882_s15 = smov 0   ;;  %s884_s16 = smov 0   ;;  %s1069_s0 = inlined_call_operand.vmem [shape: f32[2,16,256], index: 0, kind: input, shape index: {}]   ;;  %s1070_s1 = inlined_call_operand.vmem [shape: f32[9,16,256], index: 1, kind: input, shape index: {}]   ;;  %s1071_s2 = inlined_call_operand.vmem [shape: f32[2,16,256], index: 2, kind: output, shape index: {0}]   ;;  %s1072_s3 = inlined_call_operand.vmem [shape: f32[2,2,8,1], index: 3, kind: output, shape index: {1}]   ;;  %s1073_s4 = inlined_call_operand.vmem [shape: f32[2,2,8,1], index: 4, kind: output, shape index: {2}]  }
   0x1   :  { %s886_s17 = smov 0   ;;  %s888_s18 = smov 0  }
   0x2   :  { %s890_s19 = smov 0   ;;  %s892_s20 = smov 0  }
   0x3   :  { %s894_s21 = smov 0  }
   0x4 LB: > { %s24_s22 = sadd.s32 1, %s839_s19  ;;  %s27_s23 = sadd.s32 1, %s843_s20  ;;  %s847_s21 = sphi %s894_s21, %s15_s21   ;;  %s843_s20 = sphi %s892_s20, %s1079_s20   ;;  %s839_s19 = sphi %s890_s19, %s1078_s19   ;;  %s835_s18 = sphi %s888_s18, %s1077_s18   ;;  %s831_s17 = sphi %s886_s17, %s1076_s17   ;;  %s827_s16 = sphi %s884_s16, %s1075_s16   ;;  %s823_s15 = sphi %s882_s15, %s1074_s15  }
   0x5   : > { %p25_p0 = scmp.ge.s32.totalorder %s24_s22, 2  ;;  %s62_s24 = sadd.s32 1, %s827_s16 }
   0x6   : > { %p69_p1 = scmp.ne.s32.totalorder %s827_s16, %s823_s15  ;;  %p70_p2 = scmp.eq.s32.totalorder %s847_s21, 0 }
   0x7   : > { %s1081_s22 = smov (%p25_p0, %s24_s22), 0  ;;  %s1083_s23 = smov (!%p25_p0, %s27_s23), %s843_s20 }
   0x8   : > { %s59_s25 = ssub.s32 %s839_s19, %s1081_s22  ;;  %p71_p3 = por %p70_p2, %p69_p1 }
   0x9   : > { %p29_p4 = scmp.ge.s32.totalorder %s1083_s23, 2  ;;  %p60_p5 = scmp.eq.s32.totalorder %s59_s25, 0 }
   0xa   : > { %p694_p6 = scmp.ge.s32.totalorder %s847_s21, 4 }
   0xb   : > { %s1085_s23 = smov (%p29_p4, %s1083_s23), 0 }
   0xc   : > { %s931_s26 = scalar_select %p60_p5, %s827_s16, %s62_s24  }
   0xd   : > { %179 = sbr.rel (%p694_p6) target bundleno = 31 (0x1f), region = 16 }
  0x12   : > { %194 = sbr.rel (!%p71_p3) target bundleno = 31 (0x1f), region = 24  ;;  %s196_s27 = sand.u32 (%p71_p3), 1, %s827_s16  }
  0x13   : > { %s726_s28 = sshll.u32 (%p71_p3), %s839_s19, 4  ;;  %s727_s29 = smul.u32 (%p71_p3), 144, %s196_s27 }
  0x14   : > { %s939_s6 = scalar_lea.vmem (%p71_p3), %s1070_s1, %s726_s28 }
  0x15   : > { %v214_v0 = vld [vmem:[%s939_s6] sm:$0xff] (%p71_p3)  ;;  %v216_v1 = vld [vmem:[%s939_s6 + $0x8] sm:$0xff] (%p71_p3)  ;;  %s198_s7 = scalar_lea.vmem (%p71_p3), [#allocation2], %s727_s29 }
  0x16   : > { %v218_v2 = vld [vmem:[%s939_s6 + $0x20] sm:$0xff] (%p71_p3)  ;;  %v220_v3 = vld [vmem:[%s939_s6 + $0x28] sm:$0xff] (%p71_p3)  ;;  %215 = vst [vmem:[%s198_s7] sm:$0xff] (%p71_p3), %v214_v0  ;;  %217 = vst [vmem:[%s198_s7 + $0x8] sm:$0xff] (%p71_p3), %v216_v1 }
  0x17   : > { %v222_v4 = vld [vmem:[%s939_s6 + $0x40] sm:$0xff]  ;;  %v224_v5 = vld [vmem:[%s939_s6 + $0x48] sm:$0xff]  ;;  %219 = vst [vmem:[%s198_s7 + $0x10] sm:$0xff] %v218_v2  ;;  %221 = vst [vmem:[%s198_s7 + $0x18] sm:$0xff] %v220_v3 }
  0x18   : > { %223 = vst [vmem:[%s198_s7 + $0x20] sm:$0xff] %v222_v4  ;;  %225 = vst [vmem:[%s198_s7 + $0x28] sm:$0xff] %v224_v5  ;;  %v226_v6 = vld [vmem:[%s939_s6 + $0x60] sm:$0xff]  ;;  %v228_v7 = vld [vmem:[%s939_s6 + $0x68] sm:$0xff] }
  0x19   : > { %v230_v8 = vld [vmem:[%s939_s6 + $0x80] sm:$0xff]  ;;  %227 = vst [vmem:[%s198_s7 + $0x30] sm:$0xff] %v226_v6  ;;  %229 = vst [vmem:[%s198_s7 + $0x38] sm:$0xff] %v228_v7  ;;  %v232_v9 = vld [vmem:[%s939_s6 + $0x88] sm:$0xff] }
  0x1a   : > { %231 = vst [vmem:[%s198_s7 + $0x40] sm:$0xff] %v230_v8  ;;  %v234_v10 = vld [vmem:[%s939_s6 + $0xa0] sm:$0xff]  ;;  %v236_v11 = vld [vmem:[%s939_s6 + $0xa8] sm:$0xff]  ;;  %233 = vst [vmem:[%s198_s7 + $0x48] sm:$0xff] %v232_v9 }
  0x1b   : > { %235 = vst [vmem:[%s198_s7 + $0x50] sm:$0xff] %v234_v10  ;;  %237 = vst [vmem:[%s198_s7 + $0x58] sm:$0xff] %v236_v11  ;;  %v238_v12 = vld [vmem:[%s939_s6 + $0xc0] sm:$0xff]  ;;  %v240_v13 = vld [vmem:[%s939_s6 + $0xc8] sm:$0xff] }
  0x1c   : > { %v242_v14 = vld [vmem:[%s939_s6 + $0xe0] sm:$0xff]  ;;  %239 = vst [vmem:[%s198_s7 + $0x60] sm:$0xff] %v238_v12  ;;  %241 = vst [vmem:[%s198_s7 + $0x68] sm:$0xff] %v240_v13  ;;  %v244_v15 = vld [vmem:[%s939_s6 + $0xe8] sm:$0xff] }
  0x1d   : > { %243 = vst [vmem:[%s198_s7 + $0x70] sm:$0xff] %v242_v14  ;;  %v246_v16 = vld [vmem:[%s939_s6 + $0x100] sm:$0xff]  ;;  %v248_v17 = vld [vmem:[%s939_s6 + $0x108] sm:$0xff]  ;;  %245 = vst [vmem:[%s198_s7 + $0x78] sm:$0xff] %v244_v15 }
  0x1e   : > { %247 = vst [vmem:[%s198_s7 + $0x80] sm:$0xff] %v246_v16  ;;  %249 = vst [vmem:[%s198_s7 + $0x88] sm:$0xff] %v248_v17 }
  0x1f PF: > { %p697_p7 = scmp.ge.s32.totalorder %s847_s21, 1  ;;  %p254_p8 = scmp.lt.s32.totalorder %s847_s21, 5 }
  0x21   : > { %p255_p9 = pnand %p697_p7, %p254_p8 }
  0x22   : > { %p315_p10 = scmp.lt.s32.totalorder (!%p255_p9), %s835_s18, 1  ;;  %p317_p11 = scmp.lt.s32.totalorder (!%p255_p9), %s831_s17, 1 }
  0x23   : > { %258 = sbr.rel (%p255_p9) target bundleno = 337 (0x151), region = 47  ;;  %s849_s24 = smov (!%p255_p9), 16  }
  0x24   : > { %s850_s25 = smov (!%p255_p9), 17   ;;  %s851_s27 = smov (!%p255_p9), 15  }
  0x25   : > { %s852_s28 = smov (!%p255_p9), 1   ;;  %s853_s29 = smov (!%p255_p9), 127  }
  0x26   : > { %s854_s30 = smov (!%p255_p9), 113   ;;  %s855_s5 = smov (!%p255_p9), 112  }
  0x28   : > { %s1087_s18 = smov (!%p315_p10, %s835_s18), 1  ;;  %s1089_s17 = smov (!%p317_p11, %s831_s17), 1  ;;  %v355_v20 = vlaneseq  ;;  %vm476_vm8 = vcmask 7168  }
  0x29   : > { %s699_s8 = sshll.u32 %s1087_s18, 2  ;;  %s698_s9 = sshll.u32 %s1089_s17, 1 }
  0x2a   : > { %s971_s10 = sadd.s32 %s699_s8, %s698_s9  ;;  %s704_s6 = sshll.u32 %s1087_s18, 1  ;;  %v1004_v23 = vand.u32 127, %v355_v20 }
  0x2b   : > { %s700_s11 = sshll.u32 %s971_s10, 3  ;;  %s999_s7 = sadd.s32 %s704_s6, %s1089_s17 }
  0x2c   : > { %s323_s14 = scalar_lea.vmem %s1069_s0, %s700_s11  ;;  %s856_s8 = smov 111   ;;  %vm370_vm0 = vcmp.lt.s32.totalorder %v1004_v23, 16  ;;  %vm357_vm1 = vcmp.lt.s32.totalorder %v1004_v23, 17  ;;  %vm384_vm2 = vcmp.lt.s32.totalorder %v1004_v23, 15  ;;  %vm398_vm3 = vcmp.lt.s32.totalorder %v1004_v23, 1 }
  0x2d   : > { %v979_v18 = vld [vmem:[%s323_s14] sm:$0xff]  ;;  %v983_v19 = vld [vmem:[%s323_s14 + $0x8] sm:$0xff]  ;;  %s261_s9 = sand.u32 1, %s823_s15   ;;  %vm419_vm4 = vcmp.lt.s32.totalorder %v1004_v23, 127  ;;  %vm433_vm5 = vcmp.lt.s32.totalorder %v1004_v23, 113  ;;  %vm447_vm6 = vcmp.lt.s32.totalorder %v1004_v23, 112  ;;  %s332_s13 = scalar_lea.vmem %s1071_s2, %s700_s11 }
  0x2e   : > { %366 = vrot.lane.b32.xlu1 %v979_v18, %s849_s24  ;;  %351 = vrot.lane.b32.xlu0 %v979_v18, %s850_s25  ;;  %s728_s12 = smul.u32 144, %s261_s9  ;;  %vm461_vm7 = vcmp.lt.s32.totalorder %v1004_v23, 111  ;;  %s705_s14 = sshll.u32 %s999_s7, 3 }
  0x2f   : > { %s348_s11 = scalar_lea.vmem %s1073_s4, %s705_s14 }
  0x30   : > { %s1008_s17 = scalar_lea.vmem [#allocation2], %s728_s12 }
  0x31   : > { %v708_v26 = vld [vmem:[%s1008_s17 + $0x10] sm:$0xff]  ;;  %v709_v29 = vld [vmem:[%s1008_s17 + $0x18] sm:$0xff]  ;;  %v360_v32 = vld [vmem:[%s1008_s17] sm:$0xff] }
  0x32   : > { %368 = vrot.lane.b32.xlu1 %v983_v19, %s849_s24  ;;  %353 = vrot.lane.b32.xlu0 %v983_v19, %s850_s25  ;;  %v361_v33 = vld [vmem:[%s1008_s17 + $0x8] sm:$0xff]  ;;  %v710_v38 = vld [vmem:[%s1008_s17 + $0x20] sm:$0xff] }
  0x33   : > { %v711_v39 = vld [vmem:[%s1008_s17 + $0x28] sm:$0xff]  ;;  %v712_v44 = vld [vmem:[%s1008_s17 + $0x30] sm:$0xff]  ;;  %v713_v45 = vld [vmem:[%s1008_s17 + $0x38] sm:$0xff] }
  0x34   : > { %v714_v56 = vld [vmem:[%s1008_s17 + $0x40] sm:$0xff]  ;;  %v715_v57 = vld [vmem:[%s1008_s17 + $0x48] sm:$0xff]  ;;  %v716_v4 = vld [vmem:[%s1008_s17 + $0x50] sm:$0xff] }
  0x35   : > { %v411_v0 = vmul.f32 %v714_v56, %v979_v18  ;;  %v412_v1 = vmul.f32 %v715_v57, %v983_v19  ;;  %v717_v5 = vld [vmem:[%s1008_s17 + $0x58] sm:$0xff]  ;;  %v718_v10 = vld [vmem:[%s1008_s17 + $0x60] sm:$0xff]  ;;  %v719_v11 = vld [vmem:[%s1008_s17 + $0x68] sm:$0xff] }
  0x36   : > { %382 = vrot.lane.b32.xlu1 %v983_v19, %s851_s27  ;;  %380 = vrot.lane.b32.xlu0 %v979_v18, %s851_s27  ;;  %v720_v16 = vld [vmem:[%s1008_s17 + $0x70] sm:$0xff]  ;;  %v721_v17 = vld [vmem:[%s1008_s17 + $0x78] sm:$0xff]  ;;  %s340_s27 = scalar_lea.vmem %s1072_s3, %s705_s14 }
  0x3a   : > { %396 = vrot.lane.b32.xlu1 %v983_v19, %s852_s28  ;;  %394 = vrot.lane.b32.xlu0 %v979_v18, %s852_s28 }
  0x3e   : > { %417 = vrot.lane.b32.xlu1 %v983_v19, %s853_s29  ;;  %415 = vrot.lane.b32.xlu0 %v979_v18, %s853_s29 }
  0x42   : > { %431 = vrot.lane.b32.xlu1 %v983_v19, %s854_s30  ;;  %429 = vrot.lane.b32.xlu0 %v979_v18, %s854_s30 }
  0x46   : > { %445 = vrot.lane.b32.xlu1 %v983_v19, %s855_s5  ;;  %443 = vrot.lane.b32.xlu0 %v979_v18, %s855_s5 }
  0x4a   : > { %459 = vrot.lane.b32.xlu1 %v983_v19, %s856_s8  ;;  %457 = vrot.lane.b32.xlu0 %v979_v18, %s856_s8 }
  0xa0   : > { %v367_v21 = vpop.permute.xlu1 %366  ;;  %v352_v22 = vpop.permute.xlu0 %351 }
  0xa4   : > { %v369_v24 = vpop.permute.xlu1 %368  ;;  %v354_v25 = vpop.permute.xlu0 %353 }
  0xa5   : > { %v371_v27 = vsel %vm370_vm0, %v367_v21, %v369_v24  ;;  %v372_v28 = vsel %vm370_vm0, %v369_v24, %v367_v21  ;;  %v358_v30 = vsel %vm357_vm1, %v352_v22, %v354_v25  ;;  %v359_v31 = vsel %vm357_vm1, %v354_v25, %v352_v22 }
  0xa6   : > { %v376_v40 = vmul.f32 %v708_v26, %v372_v28  ;;  %v377_v41 = vmul.f32 %v709_v29, %v371_v27  ;;  %v362_v42 = vmul.f32 %v360_v32, %v359_v31  ;;  %v363_v43 = vmul.f32 %v361_v33, %v358_v30  ;;  %v722_v29 = vld [vmem:[%s1008_s17 + $0x80] sm:$0xff]  ;;  %v723_v30 = vld [vmem:[%s1008_s17 + $0x88] sm:$0xff] }
  0xa8   : > { %v383_v34 = vpop.permute.xlu1 %382  ;;  %v381_v35 = vpop.permute.xlu0 %380  ;;  %v378_v52 = vadd.f32 %v376_v40, %v362_v42  ;;  %v379_v53 = vadd.f32 %v377_v41, %v363_v43 }
  0xa9   : > { %v385_v36 = vsel %vm384_vm2, %v381_v35, %v383_v34  ;;  %v386_v37 = vsel %vm384_vm2, %v383_v34, %v381_v35 }
  0xaa   : > { %v390_v46 = vmul.f32 %v710_v38, %v386_v37  ;;  %v391_v47 = vmul.f32 %v711_v39, %v385_v36 }
  0xac   : > { %v397_v48 = vpop.permute.xlu1 %396  ;;  %v395_v49 = vpop.permute.xlu0 %394  ;;  %v392_v58 = vadd.f32 %v390_v46, %v378_v52  ;;  %v393_v59 = vadd.f32 %v391_v47, %v379_v53 }
  0xad   : > { %v399_v50 = vsel %vm398_vm3, %v395_v49, %v397_v48  ;;  %v400_v51 = vsel %vm398_vm3, %v397_v48, %v395_v49 }
  0xae   : > { %v404_v54 = vmul.f32 %v712_v44, %v400_v51  ;;  %v405_v55 = vmul.f32 %v713_v45, %v399_v50 }
  0xb0   : > { %v418_v60 = vpop.permute.xlu1 %417  ;;  %v416_v61 = vpop.permute.xlu0 %415  ;;  %v406_v62 = vadd.f32 %v404_v54, %v392_v58  ;;  %v407_v63 = vadd.f32 %v405_v55, %v393_v59 }
  0xb1   : > { %v420_v2 = vsel %vm419_vm4, %v416_v61, %v418_v60  ;;  %v421_v3 = vsel %vm419_vm4, %v418_v60, %v416_v61 }
  0xb2   : > { %v413_v12 = vadd.f32 %v411_v0, %v406_v62  ;;  %v414_v13 = vadd.f32 %v412_v1, %v407_v63  ;;  %v425_v14 = vmul.f32 %v716_v4, %v420_v2  ;;  %v426_v15 = vmul.f32 %v717_v5, %v421_v3 }
  0xb4   : > { %v432_v6 = vpop.permute.xlu1 %431  ;;  %v430_v7 = vpop.permute.xlu0 %429  ;;  %v427_v25 = vadd.f32 %v425_v14, %v413_v12  ;;  %v428_v26 = vadd.f32 %v426_v15, %v414_v13 }
  0xb5   : > { %v434_v8 = vsel %vm433_vm5, %v430_v7, %v432_v6  ;;  %v435_v9 = vsel %vm433_vm5, %v432_v6, %v430_v7 }
  0xb6   : > { %v439_v18 = vmul.f32 %v718_v10, %v434_v8  ;;  %v440_v19 = vmul.f32 %v719_v11, %v435_v9 }
  0xb8   : > { %v446_v20 = vpop.permute.xlu1 %445  ;;  %v444_v21 = vpop.permute.xlu0 %443  ;;  %v441_v31 = vadd.f32 %v439_v18, %v427_v25  ;;  %v442_v32 = vadd.f32 %v440_v19, %v428_v26 }
  0xb9   : > { %v448_v22 = vsel %vm447_vm6, %v444_v21, %v446_v20  ;;  %v449_v24 = vsel %vm447_vm6, %v446_v20, %v444_v21 }
  0xba   : > { %v453_v27 = vmul.f32 %v720_v16, %v448_v22  ;;  %v454_v28 = vmul.f32 %v721_v17, %v449_v24 }
  0xbc   : > { %v460_v33 = vpop.permute.xlu1 %459  ;;  %v458_v34 = vpop.permute.xlu0 %457  ;;  %v455_v37 = vadd.f32 %v453_v27, %v441_v31  ;;  %v456_v38 = vadd.f32 %v454_v28, %v442_v32 }
  0xbd   : > { %v462_v35 = vsel %vm461_vm7, %v458_v34, %v460_v33  ;;  %v463_v36 = vsel %vm461_vm7, %v460_v33, %v458_v34 }
  0xbe   : > { %v467_v39 = vmul.f32 %v722_v29, %v462_v35  ;;  %v468_v40 = vmul.f32 %v723_v30, %v463_v36 }
  0xc0   : > { %v469_v23 = vadd.f32 %v467_v39, %v455_v37  ;;  %v470_v41 = vadd.f32 %v468_v40, %v456_v38 }
  0xc2   : > { %471 = vst [vmem:[%s332_s13] sm:$0xff] %v469_v23  ;;  %472 = vst [vmem:[%s332_s13 + $0x8] sm:$0xff] %v470_v41  ;;  %v473_v42 = vadd.f32 %v470_v41, %v469_v23  ;;  %v478_v43 = vmul.f32 %v469_v23, %v469_v23  ;;  %v479_v44 = vmul.f32 %v470_v41, %v470_v41 }
  0xc4   : > { %474 = vadd.xlane.f32.xlu0 %v473_v42  ;;  %v480_v45 = vadd.f32 %v479_v44, %v478_v43 }
  0xc6   : > { %481 = vadd.xlane.f32.xlu1 %v480_v45 }
 0x14d   : > { %v475_v46 = vpop.xlane.xlu0 %474 }
 0x14e   : > { %477 = vst.msk [vmem:[%s340_s27] sm:$0xff] %vm476_vm8, %v475_v46 }
 0x14f   : > { %v482_v47 = vpop.xlane.xlu1 %481 }
 0x150   : > { %483 = vst.msk [vmem:[%s348_s11] sm:$0xff] %vm476_vm8, %v482_v47 }
 0x151 PF: > { %s15_s21 = sadd.s32 1, %s847_s21   ;;  %s1074_s15 = smov %s827_s16 }
 0x152   : > { %p12_p12 = scmp.ge.s32.totalorder %s15_s21, 6   ;;  %s1075_s16 = smov %s931_s26 }
 0x153   : > { %s1076_s17 = smov %s839_s19  ;;  %s1077_s18 = smov %s843_s20 }
 0x154   : > { %s1078_s19 = smov %s1081_s22  ;;  %s1079_s20 = smov %s1085_s23 }
 0x155   :  { %14 = sbr.rel (!%p12_p12) target bundleno = 4 (0x4), region = 121 }

// kernel: dsnet_block.4
= control target key start
LH: loop header
LB: loop body
LE: loop exit
PB: predicated region body
PF: predicated region fallthrough
CT: control target
= control target key end

     0   :  { %s840_s21 = smov 0   ;;  %s842_s22 = smov 0   ;;  %s920_s0 = inlined_call_operand.vmem [shape: f32[2,16,256], index: 0, kind: input, shape index: {}]   ;;  %s921_s1 = inlined_call_operand.vmem [shape: f32[16,1], index: 1, kind: input, shape index: {}]   ;;  %s922_s2 = inlined_call_operand.vmem [shape: f32[16,1], index: 2, kind: input, shape index: {}]   ;;  %s923_s3 = inlined_call_operand.vmem [shape: f32[32,16], index: 3, kind: input, shape index: {}]   ;;  %s924_s4 = inlined_call_operand.vmem [shape: f32[2,32,256], index: 4, kind: output, shape index: {0}]   ;;  %s925_s5 = inlined_call_operand.vmem [shape: f32[2,1,32,1], index: 5, kind: output, shape index: {1}]   ;;  %s926_s6 = inlined_call_operand.vmem [shape: f32[2,1,32,1], index: 6, kind: output, shape index: {2}]  }
   0x1   :  { %s844_s23 = smov 0  }
   0x2 LB: > { %s29_s24 = sadd.s32 1, %s797_s22  ;;  %p728_p0 = scmp.ge.s32.totalorder %s801_s23, 1  ;;  %s801_s23 = sphi %s844_s23, %s17_s23   ;;  %s797_s22 = sphi %s842_s22, %s928_s22   ;;  %s793_s21 = sphi %s840_s21, %s927_s21  }
   0x3   : > { %p31_p1 = scmp.ge.s32.totalorder %s29_s24, 2  ;;  %p242_p2 = scmp.lt.s32.totalorder %s801_s23, 3 }
   0x5   : > { %s930_s24 = smov (%p31_p1, %s29_s24), 0  ;;  %p243_p3 = pnand %p728_p0, %p242_p2 }
   0x6   : > { %p299_p4 = scmp.lt.s32.totalorder (!%p243_p3), %s793_s21, 1 }
   0x7   : > { %246 = sbr.rel (%p243_p3) target bundleno = 502 (0x1f6), region = 36 }
   0xc   : > { %v357_v0 = vld [vmem:[%s922_s2 + $0x8] sm:$0xff]  ;;  %v803_v2 = vmov 0   ;;  %v356_v3 = vld [vmem:[%s922_s2] sm:$0xff]  ;;  %v804_v5 = vmov 0.0   ;;  %s932_s21 = smov (!%p299_p4, %s793_s21), 1  ;;  %vm380_vm0 = vcmask 130048  }
   0xd   : > { %v341_v1 = vld [vmem:[%s921_s1 + $0x8] sm:$0xff]  ;;  %778 = vset.pattern.permute.xlu1 %v803_v2  ;;  %777 = vset.pattern.permute.xlu0 %v803_v2  ;;  %v340_v4 = vld [vmem:[%s921_s1] sm:$0xff]  ;;  %s873_s9 = sshll.u32 %s932_s21, 5  ;;  %v378_v27 = vld [vmem:[%s923_s3 + $0x10] sm:$0xff]  ;;  %s744_s25 = sshll.u32 %s932_s21, 6  ;;  %vm502_vm1 = vcmask 7168  }
   0xe   : > { %365 = vperm.xlu1 %778, %v357_v0   ;;  %349 = vperm.xlu0 %777, %v341_v1   ;;  %s306_s12 = scalar_lea.vmem %s920_s0, %s873_s9  ;;  %v376_v26 = vld [vmem:[%s923_s3] sm:$0xff]  ;;  %v377_v28 = vld [vmem:[%s923_s3 + $0x8] sm:$0xff]  ;;  %v379_v29 = vld [vmem:[%s923_s3 + $0x18] sm:$0xff]  ;;  %s316_s28 = scalar_lea.vmem %s924_s4, %s744_s25 }
   0xf   : > { %457 = vmatprep.mubr.f32.mxu0 %v804_v5  ;;  %469 = vmatprep.mubr.f32.mxu1 %v804_v5  ;;  %v338_v6 = vld [vmem:[%s306_s12 + $0x10] sm:$0xff]  ;;  %v339_v7 = vld [vmem:[%s306_s12 + $0x18] sm:$0xff]  ;;  %v336_v12 = vld [vmem:[%s306_s12] sm:$0xff]  ;;  %s326_s30 = scalar_lea.vmem %s925_s5, %s873_s9  ;;  %s335_s10 = scalar_lea.vmem %s926_s6, %s873_s9 }
  0x10   : > { %v337_v13 = vld [vmem:[%s306_s12 + $0x8] sm:$0xff] }
  0x12   : > { %360 = vperm.xlu1 %778, %v356_v3   ;;  %344 = vperm.xlu0 %777, %v340_v4  }
  0x89   : > { %v366_v8 = vpop.permute.xlu1 %365  ;;  %v350_v9 = vpop.permute.xlu0 %349 }
  0x8a   : > { %v354_v10 = vmul.f32 %v350_v9, %v338_v6  ;;  %v355_v11 = vmul.f32 %v350_v9, %v339_v7 }
  0x8c   : > { %v371_v14 = vadd.f32 %v366_v8, %v355_v11  ;;  %v370_v15 = vadd.f32 %v366_v8, %v354_v10 }
  0x8d   : > { %v345_v16 = vpop.permute.xlu0 %344  ;;  %v361_v21 = vpop.permute.xlu1 %360 }
  0x8e   : > { %v352_v17 = vmul.f32 %v345_v16, %v336_v12  ;;  %v353_v18 = vmul.f32 %v345_v16, %v337_v13  ;;  %v375_v19 = vmax.f32 %v371_v14, 0.0  ;;  %v374_v20 = vmax.f32 %v370_v15, 0.0 }
  0x90   : > { %v368_v22 = vadd.f32 %v361_v21, %v352_v17  ;;  %v369_v23 = vadd.f32 %v361_v21, %v353_v18  ;;  %421 = vmatprep.subr.mxu0 %v375_v19  ;;  %747 = vmatprep.subr.mxu1 %v375_v19 }
  0x91   : > { %422 = vmatpush1.msra.mxu0 %v374_v20  ;;  %749 = vmatpush1.msra.mxu1 %v374_v20 }
  0x92   : > { %v373_v24 = vmax.f32 %v369_v23, 0.0  ;;  %v372_v25 = vmax.f32 %v368_v22, 0.0 }
  0x94   : > { %423 = vmatprep.subr.mxu0 %v373_v24  ;;  %748 = vmatprep.subr.mxu1 %v373_v24 }
  0x95   : > { %424 = vmatpush1.msra.mxu0 %v372_v25  ;;  %750 = vmatpush1.msra.mxu1 %v372_v25 }
  0x96   : > { %737 = vmatmul.mubr.msk.f32.vlgmr.msra.gmra.mxu0 %vm380_vm0, %v376_v26  ;;  %739 = vmatmul.mubr.msk.f32.vlgmr.msra.gmra.mxu1 %vm380_vm0, %v378_v27 }
  0x97   : > { %463 = vmatprep.mubr.f32.mxu0 %v804_v5  ;;  %475 = vmatprep.mubr.f32.mxu1 %v804_v5 }
  0x9a   : > { %738 = vmatmul.mubr.msk.f32.gmra.mxu0 %vm380_vm0, %v377_v28  ;;  %740 = vmatmul.mubr.msk.f32.gmra.mxu1 %vm380_vm0, %v379_v29 }
 0x156   : > { %v459_v30 = vpop.f32.mrf.mxu0  ;;  %v471_v31 = vpop.f32.mrf.mxu1 }
 0x157   : > { %482 = vst [vmem:[%s316_s28] sm:$0xff] %v459_v30  ;;  %486 = vst [vmem:[%s316_s28 + $0x20] sm:$0xff] %v471_v31  ;;  %v507_v35 = vmul.f32 %v459_v30, %v459_v30  ;;  %v511_v44 = vmul.f32 %v471_v31, %v471_v31 }
 0x158   : > { %v461_v32 = vpop.f32.mrf.mxu0  ;;  %v473_v33 = vpop.f32.mrf.mxu1 }
 0x159   : > { %483 = vst [vmem:[%s316_s28 + $0x8] sm:$0xff] %v461_v32  ;;  %487 = vst [vmem:[%s316_s28 + $0x28] sm:$0xff] %v473_v33  ;;  %v490_v34 = vadd.f32 %v461_v32, %v459_v30  ;;  %v508_v36 = vmul.f32 %v461_v32, %v461_v32  ;;  %v496_v42 = vadd.f32 %v473_v33, %v471_v31 }
 0x15a   : > { %v465_v37 = vpop.f32.mrf.mxu0  ;;  %v477_v38 = vpop.f32.mrf.mxu1  ;;  %v512_v45 = vmul.f32 %v473_v33, %v473_v33 }
 0x15b   : > { %491 = vadd.xlane.f32.xlu0 %v490_v34  ;;  %484 = vst [vmem:[%s316_s28 + $0x10] sm:$0xff] %v465_v37  ;;  %488 = vst [vmem:[%s316_s28 + $0x30] sm:$0xff] %v477_v38  ;;  %v515_v39 = vadd.f32 %v508_v36, %v507_v35  ;;  %v509_v48 = vmul.f32 %v465_v37, %v465_v37  ;;  %v513_v52 = vmul.f32 %v477_v38, %v477_v38 }
 0x15c   : > { %v467_v40 = vpop.f32.mrf.mxu0  ;;  %v479_v41 = vpop.f32.mrf.mxu1  ;;  %v521_v49 = vadd.f32 %v512_v45, %v511_v44 }
 0x15d   : > { %516 = vadd.xlane.f32.xlu1 %v515_v39  ;;  %485 = vst [vmem:[%s316_s28 + $0x18] sm:$0xff] %v467_v40  ;;  %489 = vst [vmem:[%s316_s28 + $0x38] sm:$0xff] %v479_v41  ;;  %v493_v43 = vadd.f32 %v467_v40, %v465_v37  ;;  %v510_v46 = vmul.f32 %v467_v40, %v467_v40  ;;  %v499_v47 = vadd.f32 %v479_v41, %v477_v38 }
 0x15e   : > { %v514_v50 = vmul.f32 %v479_v41, %v479_v41 }
 0x15f   : > { %497 = vadd.xlane.f32.xlu0 %v496_v42  ;;  %v518_v51 = vadd.f32 %v510_v46, %v509_v48 }
 0x160   : > { %v524_v53 = vadd.f32 %v514_v50, %v513_v52 }
 0x161   : > { %494 = vadd.xlane.f32.xlu1 %v493_v43 }
 0x163   : > { %500 = vadd.xlane.f32.xlu0 %v499_v47 }
 0x165   : > { %522 = vadd.xlane.f32.xlu1 %v521_v49 }
 0x167   : > { %519 = vadd.xlane.f32.xlu0 %v518_v51 }
 0x16b   : > { %525 = vadd.xlane.f32.xlu0 %v524_v53 }
 0x1e4   : > { %v492_v54 = vpop.xlane.xlu0 %491 }
 0x1e5   : > { %503 = vst.msk [vmem:[%s326_s30] sm:$0xff] %vm502_vm1, %v492_v54 }
 0x1e6   : > { %v517_v55 = vpop.xlane.xlu1 %516 }
 0x1e7   : > { %527 = vst.msk [vmem:[%s335_s10] sm:$0xff] %vm502_vm1, %v517_v55 }
 0x1e8   : > { %v498_v56 = vpop.xlane.xlu0 %497 }
 0x1e9   : > { %505 = vst.msk [vmem:[%s326_s30 + $0x10] sm:$0xff] %vm502_vm1, %v498_v56 }
 0x1ea   : > { %v495_v57 = vpop.xlane.xlu1 %494 }
 0x1eb   : > { %504 = vst.msk [vmem:[%s326_s30 + $0x8] sm:$0xff] %vm502_vm1, %v495_v57 }
 0x1ec   : > { %v501_v58 = vpop.xlane.xlu0 %500 }
 0x1ed   : > { %506 = vst.msk [vmem:[%s326_s30 + $0x18] sm:$0xff] %vm502_vm1, %v501_v58 }
 0x1ee   : > { %v523_v59 = vpop.xlane.xlu1 %522 }
 0x1ef   : > { %529 = vst.msk [vmem:[%s335_s10 + $0x10] sm:$0xff] %vm502_vm1, %v523_v59 }
 0x1f0   : > { %v520_v60 = vpop.xlane.xlu0 %519 }
 0x1f1   : > { %528 = vst.msk [vmem:[%s335_s10 + $0x8] sm:$0xff] %vm502_vm1, %v520_v60 }
 0x1f4   : > { %v526_v61 = vpop.xlane.xlu0 %525 }
 0x1f5   : > { %530 = vst.msk [vmem:[%s335_s10 + $0x18] sm:$0xff] %vm502_vm1, %v526_v61 }
 0x1f6 PF: > { %s17_s23 = sadd.s32 1, %s801_s23   ;;  %s927_s21 = smov %s797_s22 }
 0x1f7   : > { %p14_p5 = scmp.ge.s32.totalorder %s17_s23, 4   ;;  %s928_s22 = smov %s930_s24 }
 0x1f9   :  { %16 = sbr.rel (!%p14_p5) target bundleno = 2 (0x2), region = 90 }

// kernel: dsnet_block.5
= control target key start
LH: loop header
LB: loop body
LE: loop exit
PB: predicated region body
PF: predicated region fallthrough
CT: control target
= control target key end

     0   :  { %s470_s12 = smov 0   ;;  %s472_s13 = smov 0   ;;  %s534_s0 = inlined_call_operand.vmem [shape: f32[2,32,256], index: 0, kind: input, shape index: {}]   ;;  %s535_s1 = inlined_call_operand.vmem [shape: f32[32,1], index: 1, kind: input, shape index: {}]   ;;  %s536_s2 = inlined_call_operand.vmem [shape: f32[32,1], index: 2, kind: input, shape index: {}]   ;;  %s537_s3 = inlined_call_operand.vmem [shape: f32[2,32,256], index: 3, kind: output, shape index: {}]  }
   0x1   :  { %s474_s14 = smov 0  }
   0x2 LB: > { %s25_s15 = sadd.s32 1, %s443_s13  ;;  %p389_p0 = scmp.ge.s32.totalorder %s447_s14, 1  ;;  %s447_s14 = sphi %s474_s14, %s13_s14   ;;  %s443_s13 = sphi %s472_s13, %s539_s13   ;;  %s439_s12 = sphi %s470_s12, %s538_s12  }
   0x3   : > { %p27_p1 = scmp.ge.s32.totalorder %s25_s15, 2  ;;  %p158_p2 = scmp.lt.s32.totalorder %s447_s14, 3 }
   0x5   : > { %s541_s15 = smov (%p27_p1, %s25_s15), 0  ;;  %p159_p3 = pnand %p389_p0, %p158_p2 }
   0x6   : > { %p191_p4 = scmp.lt.s32.totalorder (!%p159_p3), %s439_s12, 1 }
   0x7   : > { %162 = sbr.rel (%p159_p3) target bundleno = 156 (0x9c), region = 32 }
   0xc   : > { %v220_v0 = vld [vmem:[%s535_s1 + $0x10] sm:$0xff]  ;;  %v218_v1 = vld [vmem:[%s535_s1] sm:$0xff]  ;;  %v449_v2 = vmov 0   ;;  %v221_v3 = vld [vmem:[%s535_s1 + $0x18] sm:$0xff]  ;;  %s543_s12 = smov (!%p191_p4, %s439_s12), 1 }
   0xd   : > { %424 = vset.pattern.permute.xlu1 %v449_v2  ;;  %423 = vset.pattern.permute.xlu0 %v449_v2  ;;  %v219_v4 = vld [vmem:[%s535_s1 + $0x8] sm:$0xff]  ;;  %v250_v6 = vld [vmem:[%s536_s2] sm:$0xff]  ;;  %v253_v7 = vld [vmem:[%s536_s2 + $0x18] sm:$0xff]  ;;  %s396_s5 = sshll.u32 %s543_s12, 6 }
   0xe   : > { %234 = vperm.xlu1 %424, %v220_v0   ;;  %224 = vperm.xlu0 %423, %v218_v1   ;;  %v251_v5 = vld [vmem:[%s536_s2 + $0x8] sm:$0xff]  ;;  %v252_v8 = vld [vmem:[%s536_s2 + $0x10] sm:$0xff]  ;;  %s198_s8 = scalar_lea.vmem %s534_s0, %s396_s5  ;;  %s208_s11 = scalar_lea.vmem %s537_s3, %s396_s5 }
   0xf   : > { %v210_v11 = vld [vmem:[%s198_s8] sm:$0xff]  ;;  %v211_v12 = vld [vmem:[%s198_s8 + $0x8] sm:$0xff]  ;;  %v212_v15 = vld [vmem:[%s198_s8 + $0x10] sm:$0xff] }
  0x10   : > { %v213_v16 = vld [vmem:[%s198_s8 + $0x18] sm:$0xff]  ;;  %v214_v17 = vld [vmem:[%s198_s8 + $0x20] sm:$0xff]  ;;  %v215_v18 = vld [vmem:[%s198_s8 + $0x28] sm:$0xff] }
  0x11   : > { %v216_v21 = vld [vmem:[%s198_s8 + $0x30] sm:$0xff]  ;;  %v217_v22 = vld [vmem:[%s198_s8 + $0x38] sm:$0xff] }
  0x12   : > { %239 = vperm.xlu1 %424, %v221_v3   ;;  %229 = vperm.xlu0 %423, %v219_v4  }
  0x16   : > { %261 = vperm.xlu1 %424, %v251_v5   ;;  %256 = vperm.xlu0 %423, %v250_v6  }
  0x1a   : > { %271 = vperm.xlu1 %424, %v253_v7   ;;  %266 = vperm.xlu0 %423, %v252_v8  }
  0x89   : > { %v235_v9 = vpop.permute.xlu1 %234  ;;  %v225_v10 = vpop.permute.xlu0 %224 }
  0x8a   : > { %v242_v19 = vmul.f32 %v225_v10, %v210_v11  ;;  %v243_v20 = vmul.f32 %v225_v10, %v211_v12  ;;  %v246_v31 = vmul.f32 %v235_v9, %v214_v17  ;;  %v247_v32 = vmul.f32 %v235_v9, %v215_v18 }
  0x8d   : > { %v240_v13 = vpop.permute.xlu1 %239  ;;  %v230_v14 = vpop.permute.xlu0 %229 }
  0x8e   : > { %v244_v23 = vmul.f32 %v230_v14, %v212_v15  ;;  %v245_v24 = vmul.f32 %v230_v14, %v213_v16  ;;  %v248_v33 = vmul.f32 %v240_v13, %v216_v21  ;;  %v249_v34 = vmul.f32 %v240_v13, %v217_v22 }
  0x91   : > { %v262_v25 = vpop.permute.xlu1 %261  ;;  %v257_v26 = vpop.permute.xlu0 %256 }
  0x92   : > { %v276_v27 = vadd.f32 %v262_v25, %v244_v23  ;;  %v277_v28 = vadd.f32 %v262_v25, %v245_v24  ;;  %v274_v29 = vadd.f32 %v257_v26, %v242_v19  ;;  %v275_v30 = vadd.f32 %v257_v26, %v243_v20 }
  0x94   : > { %v284_v35 = vmax.f32 %v276_v27, 0.0  ;;  %v285_v36 = vmax.f32 %v277_v28, 0.0  ;;  %v282_v37 = vmax.f32 %v274_v29, 0.0  ;;  %v283_v38 = vmax.f32 %v275_v30, 0.0 }
  0x95   : > { %v272_v39 = vpop.permute.xlu1 %271  ;;  %v267_v40 = vpop.permute.xlu0 %266 }
  0x96   : > { %292 = vst [vmem:[%s208_s11 + $0x10] sm:$0xff] %v284_v35  ;;  %293 = vst [vmem:[%s208_s11 + $0x18] sm:$0xff] %v285_v36  ;;  %v280_v41 = vadd.f32 %v272_v39, %v248_v33  ;;  %v281_v42 = vadd.f32 %v272_v39, %v249_v34  ;;  %v278_v43 = vadd.f32 %v267_v40, %v246_v31 }
  0x97   : > { %290 = vst [vmem:[%s208_s11] sm:$0xff] %v282_v37  ;;  %291 = vst [vmem:[%s208_s11 + $0x8] sm:$0xff] %v283_v38  ;;  %v279_v44 = vadd.f32 %v267_v40, %v247_v32 }
  0x98   : > { %v288_v45 = vmax.f32 %v280_v41, 0.0  ;;  %v289_v46 = vmax.f32 %v281_v42, 0.0  ;;  %v286_v47 = vmax.f32 %v278_v43, 0.0 }
  0x99   : > { %v287_v48 = vmax.f32 %v279_v44, 0.0 }
  0x9a   : > { %296 = vst [vmem:[%s208_s11 + $0x30] sm:$0xff] %v288_v45  ;;  %297 = vst [vmem:[%s208_s11 + $0x38] sm:$0xff] %v289_v46 }
  0x9b   : > { %294 = vst [vmem:[%s208_s11 + $0x20] sm:$0xff] %v286_v47  ;;  %295 = vst [vmem:[%s208_s11 + $0x28] sm:$0xff] %v287_v48 }
  0x9c PF: > { %s13_s14 = sadd.s32 1, %s447_s14   ;;  %s538_s12 = smov %s443_s13 }
  0x9d   : > { %p10_p5 = scmp.ge.s32.totalorder %s13_s14, 4   ;;  %s539_s13 = smov %s541_s15 }
  0x9f   :  { %12 = sbr.rel (!%p10_p5) target bundleno = 2 (0x2), region = 62 }

</bundles_post_ra>
